<compile_context>
chip_gen: v7x
topology: tpu7x:2x2x1
jax: 0.10.0
libtpu: 0.0.40
codegen_flags: <defaults>
</compile_context>

<pallas_src>
import functools

import jax
import jax.numpy as jnp
from jax.experimental import pallas as pl
from jax.experimental.pallas import tpu as pltpu


def _round_up(v: int, m: int) -> int:
    return ((v + m - 1) // m) * m


def _simple_single_layer_kernel(x_ref, w1_ref, b1_ref, w2_ref, b2_ref, o_ref,
                                *, negative_slope: float, compute_dtype):
    # x_ref : (TB, N)       batch tile of inputs (unpadded feature dim), f32
    # w1_ref: (N,  Np)      dense_layer1 weight, pre-transposed, out-dim padded, bf16
    # b1_ref: (1,  Np)      dense_layer1 bias (zero-padded), f32
    # w2_ref: (Np, Np)      dense_layer2 weight, pre-transposed + zero-padded, bf16
    # b2_ref: (1,  Np)      dense_layer2 bias (zero-padded), f32
    # o_ref : (TB, Np)      f32
    x = x_ref[...].astype(compute_dtype)

    # dense_layer1 on the MXU (bf16 inputs, f32 accumulation), bias add in f32.
    h = jnp.dot(x, w1_ref[...], preferred_element_type=jnp.float32) + b1_ref[...]

    # LeakyReLU(negative_slope=0.01): slope < 1  =>  max(h, slope*h).
    h = jnp.maximum(h, negative_slope * h)

    # TODO(synk): training-mode Dropout(p=0.2) omitted; inference semantics (identity).

    # dense_layer2 on the MXU.
    y = jnp.dot(h.astype(compute_dtype), w2_ref[...],
                preferred_element_type=jnp.float32) + b2_ref[...]
    o_ref[...] = y.astype(o_ref.dtype)


def prepare_simple_single_layer_params(w1, b1, w2, b2,
                                       weights_dtype=jnp.bfloat16):
    """One-time parameter prep (transpose + zero-pad).  Do NOT call per step.

    w1, w2: (N, N) PyTorch Linear layout (out x in);  b1, b2: (N,)
    Returns (w1t, b1p, w2t, b2p) ready for simple_single_layer_forward().
    Zero padding is mathematically exact: padded columns of W1^T produce
    h[:, N:] = LeakyReLU(0) = 0, which feed zero rows of the padded W2^T.
    """
    N = w1.shape[0]
    n_pad = max(128, _round_up(N, 128))          # lane-dense output width
    w1t = jnp.zeros((N, n_pad), weights_dtype).at[:, :N].set(
        w1.T.astype(weights_dtype))              # pad output dim only
    w2t = jnp.zeros((n_pad, n_pad), weights_dtype).at[:N, :N].set(
        w2.T.astype(weights_dtype))
    b1p = jnp.zeros((1, n_pad), jnp.float32).at[0, :N].set(b1.astype(jnp.float32))
    b2p = jnp.zeros((1, n_pad), jnp.float32).at[0, :N].set(b2.astype(jnp.float32))
    return w1t, b1p, w2t, b2p


def simple_single_layer_forward(x, params, *,
                                negative_slope: float = 0.01,
                                block_b: int = 512):
    """Forward pass of SimpleSingleLayerNetwork (eval mode).

    x      : (B, N) float32 (unpadded)
    params : output of prepare_simple_single_layer_params()
    returns: (B, N) float32
    """
    w1t, b1p, w2t, b2p = params
    B, N = x.shape
    n_pad = w1t.shape[1]
    assert w1t.shape == (N, n_pad) and w2t.shape == (n_pad, n_pad)
    dt = jnp.float32

    # Batch tile: multiple of 8 sublanes; stays = B (one grid step) for small B
    # so weights are read from HBM exactly once; grows to block_b for large B.
    tb = min(block_b, _round_up(B, 8))
    grid = (pl.cdiv(B, tb),)

    # VMEM budget derived from the actual footprint (double-buffered tiles +
    # resident weights + in-kernel f32 temporaries), capped at v7x's 64 MiB.
    wbytes = jnp.dtype(w1t.dtype).itemsize
    xbytes = jnp.dtype(x.dtype).itemsize
    footprint = (2 * tb * N * xbytes                 # x tiles (double-buffered)
                 + 2 * tb * n_pad * 4                # out tiles (double-buffered)
                 + 2 * (N + n_pad) * n_pad * wbytes  # W1 + W2 (conservative 2x)
                 + 4 * n_pad * 4                     # biases
                 + 6 * tb * n_pad * 4)               # in-kernel h/y temporaries
    vmem_limit = min(max(int(footprint * 1.5) + (2 << 20), 4 << 20), 64 << 20)

    flops = 2 * B * N * n_pad + 2 * B * n_pad * n_pad
    bytes_accessed = (xbytes * B * N + 4 * B * n_pad
                      + wbytes * (N * n_pad + n_pad * n_pad) + 4 * 2 * n_pad)

    kernel = functools.partial(_simple_single_layer_kernel,
                               negative_slope=negative_slope,
                               compute_dtype=w1t.dtype)

    out = pl.pallas_call(
        kernel,
        out_shape=jax.ShapeDtypeStruct((B, n_pad), dt),
        grid=grid,
        in_specs=[
            pl.BlockSpec((tb, N), lambda i: (i, 0)),        # x: batch-tiled, unpadded
            pl.BlockSpec((N, n_pad), lambda i: (0, 0)),     # W1^T: VMEM-resident
            pl.BlockSpec((1, n_pad), lambda i: (0, 0)),     # b1
            pl.BlockSpec((n_pad, n_pad), lambda i: (0, 0)), # W2^T: VMEM-resident
            pl.BlockSpec((1, n_pad), lambda i: (0, 0)),     # b2
        ],
        out_specs=pl.BlockSpec((tb, n_pad), lambda i: (i, 0)),
        compiler_params=pltpu.CompilerParams(
            # Grid has a single step for B <= block_b, so this is a no-op at
            # small batch (no per-TC weight re-read on v7x); it shards the
            # batch axis across TensorCores only in the large-B regime.
            dimension_semantics=("parallel",),
            vmem_limit_bytes=vmem_limit,
        ),
        cost_estimate=pl.CostEstimate(
            flops=flops, transcendentals=0, bytes_accessed=bytes_accessed),
    )(x, w1t, b1p, w2t, b2p)

    return out[:, :N]


def simple_single_layer_network(x, w1, b1, w2, b2, **kwargs):
    """Convenience one-shot wrapper (prep + forward). Prefer preparing params once."""
    params = prepare_simple_single_layer_params(w1, b1, w2, b2)
    return simple_single_layer_forward(x, params, **kwargs)


if __name__ == "__main__":
    # Small shapes consistent with the module (default network_size=339).
    batch, network_size = 8, 339

    key = jax.random.PRNGKey(0)
    kx, kw1, kb1, kw2, kb2 = jax.random.split(key, 5)

    x = jax.random.normal(kx, (batch, network_size), dtype=jnp.float32)

    bound = 1.0 / (network_size ** 0.5)   # PyTorch Linear default init range
    w1 = jax.random.uniform(kw1, (network_size, network_size), jnp.float32, -bound, bound)
    b1 = jax.random.uniform(kb1, (network_size,), jnp.float32, -bound, bound)
    w2 = jax.random.uniform(kw2, (network_size, network_size), jnp.float32, -bound, bound)
    b2 = jax.random.uniform(kb2, (network_size,), jnp.float32, -bound, bound)

    # One-time parameter prep (hoisted out of the per-call path).
    params = prepare_simple_single_layer_params(w1, b1, w2, b2)
    params = jax.block_until_ready(params)

    out = simple_single_layer_forward(x, params)
    out = jax.block_until_ready(out)
    assert out.shape == (batch, network_size)

    # Tight check against a reference using the SAME bf16 MXU-input quantization
    # (f32 accumulation), eval-mode dropout (identity).
    xb = x.astype(jnp.bfloat16)
    hp_b = jnp.dot(xb, w1.T.astype(jnp.bfloat16),
                   preferred_element_type=jnp.float32) + b1[None, :]
    h_b = jnp.maximum(hp_b, 0.01 * hp_b)
    y_b = jnp.dot(h_b.astype(jnp.bfloat16), w2.T.astype(jnp.bfloat16),
                  preferred_element_type=jnp.float32) + b2[None, :]
    assert jnp.allclose(out, y_b, atol=2e-3, rtol=2e-3)

    # Loose check against the full-f32 PyTorch-equivalent reference (bf16 weight
    # quantization bounds the difference).
    hp = jnp.dot(x, w1.T, precision=jax.lax.Precision.HIGHEST) + b1[None, :]
    h_ref = jnp.where(hp >= 0, hp, 0.01 * hp)
    y_ref = jnp.dot(h_ref, w2.T, precision=jax.lax.Precision.HIGHEST) + b2[None, :]
    assert jnp.allclose(out, y_ref, atol=5e-2, rtol=5e-2)

    print("KERNEL_OK")
</pallas_src>

<mosaic_0001>
module attributes {stable_mosaic.version = 11 : i64} {
  func.func @_simple_single_layer_kernel(%arg0: i32, %arg1: memref<8x339xf32, #tpu.memory_space<vmem>>, %arg2: memref<339x384xbf16, #tpu.memory_space<vmem>>, %arg3: memref<1x384xf32, #tpu.memory_space<vmem>>, %arg4: memref<384x384xbf16, #tpu.memory_space<vmem>>, %arg5: memref<1x384xf32, #tpu.memory_space<vmem>>, %arg6: memref<8x384xf32, #tpu.memory_space<vmem>>) attributes {dimension_semantics = [#tpu.dimension_semantics<parallel>], iteration_bounds = array<i64: 1>, scalar_prefetch = 0 : i64, scratch_operands = 0 : i64, tpu.core_type = #tpu.core_type<tc>, window_params = [{transform_indices = @transform_0, window_bounds = array<i64: 8, 339>}, {pipeline_mode = #tpu.pipeline_mode<synchronous>, transform_indices = @transform_1, window_bounds = array<i64: 339, 384>}, {pipeline_mode = #tpu.pipeline_mode<synchronous>, transform_indices = @transform_2, window_bounds = array<i64: 1, 384>}, {pipeline_mode = #tpu.pipeline_mode<synchronous>, transform_indices = @transform_3, window_bounds = array<i64: 384, 384>}, {pipeline_mode = #tpu.pipeline_mode<synchronous>, transform_indices = @transform_4, window_bounds = array<i64: 1, 384>}, {transform_indices = @transform_5, window_bounds = array<i64: 8, 384>}]} {
    %c0 = arith.constant 0 : index
    %c0_0 = arith.constant 0 : index
    %0 = vector.load %arg1[%c0, %c0_0] : memref<8x339xf32, #tpu.memory_space<vmem>>, vector<8x339xf32>
    %1 = arith.truncf %0 : vector<8x339xf32> to vector<8x339xbf16>
    %c0_1 = arith.constant 0 : index
    %c0_2 = arith.constant 0 : index
    %2 = vector.load %arg2[%c0_1, %c0_2] : memref<339x384xbf16, #tpu.memory_space<vmem>>, vector<339x384xbf16>
    %cst = arith.constant dense<0.000000e+00> : vector<8x384xf32>
    %3 = tpu.matmul %1, %2, %cst {dimension_numbers = #tpu.dot_dimension_numbers<[1], [0], [0], [1], [0, 0, 1, 1], [], []>} : vector<8x339xbf16>, vector<339x384xbf16>, vector<8x384xf32> -> vector<8x384xf32>
    %c0_3 = arith.constant 0 : index
    %c0_4 = arith.constant 0 : index
    %4 = vector.load %arg3[%c0_3, %c0_4] : memref<1x384xf32, #tpu.memory_space<vmem>>, vector<1x384xf32>
    %5 = vector.broadcast %4 : vector<1x384xf32> to vector<8x384xf32>
    %6 = arith.addf %3, %5 : vector<8x384xf32>
    %cst_5 = arith.constant 0.00999999977 : f32
    %7 = vector.broadcast %cst_5 : f32 to vector<8x384xf32>
    %8 = arith.mulf %7, %6 : vector<8x384xf32>
    %9 = arith.maximumf %6, %8 : vector<8x384xf32>
    %10 = arith.truncf %9 : vector<8x384xf32> to vector<8x384xbf16>
    %c0_6 = arith.constant 0 : index
    %c0_7 = arith.constant 0 : index
    %11 = vector.load %arg4[%c0_6, %c0_7] : memref<384x384xbf16, #tpu.memory_space<vmem>>, vector<384x384xbf16>
    %cst_8 = arith.constant dense<0.000000e+00> : vector<8x384xf32>
    %12 = tpu.matmul %10, %11, %cst_8 {dimension_numbers = #tpu.dot_dimension_numbers<[1], [0], [0], [1], [0, 0, 1, 1], [], []>} : vector<8x384xbf16>, vector<384x384xbf16>, vector<8x384xf32> -> vector<8x384xf32>
    %c0_9 = arith.constant 0 : index
    %c0_10 = arith.constant 0 : index
    %13 = vector.load %arg5[%c0_9, %c0_10] : memref<1x384xf32, #tpu.memory_space<vmem>>, vector<1x384xf32>
    %14 = vector.broadcast %13 : vector<1x384xf32> to vector<8x384xf32>
    %15 = arith.addf %12, %14 : vector<8x384xf32>
    %c0_11 = arith.constant 0 : index
    %c0_12 = arith.constant 0 : index
    %16 = vector.load %arg6[%c0_11, %c0_12] : memref<8x384xf32, #tpu.memory_space<vmem>>, vector<8x384xf32>
    tpu.vector_store %arg6[%c0_11, %c0_12], %15 {strides = array<i32>} : memref<8x384xf32, #tpu.memory_space<vmem>>, vector<8x384xf32>,
    return
  }
  func.func @transform_0(%arg0: i32) -> (i32, i32) {
    %c0_i32 = arith.constant 0 : i32
    %c0_i32_0 = arith.constant 0 : i32
    return %arg0, %c0_i32 : i32, i32
  }
  func.func @transform_1(%arg0: i32) -> (i32, i32) {
    %c0_i32 = arith.constant 0 : i32
    %c0_i32_0 = arith.constant 0 : i32
    %c0_i32_1 = arith.constant 0 : i32
    return %c0_i32, %c0_i32_0 : i32, i32
  }
  func.func @transform_2(%arg0: i32) -> (i32, i32) {
    %c0_i32 = arith.constant 0 : i32
    %c0_i32_0 = arith.constant 0 : i32
    %c0_i32_1 = arith.constant 0 : i32
    return %c0_i32, %c0_i32_0 : i32, i32
  }
  func.func @transform_3(%arg0: i32) -> (i32, i32) {
    %c0_i32 = arith.constant 0 : i32
    %c0_i32_0 = arith.constant 0 : i32
    %c0_i32_1 = arith.constant 0 : i32
    return %c0_i32, %c0_i32_0 : i32, i32
  }
  func.func @transform_4(%arg0: i32) -> (i32, i32) {
    %c0_i32 = arith.constant 0 : i32
    %c0_i32_0 = arith.constant 0 : i32
    %c0_i32_1 = arith.constant 0 : i32
    return %c0_i32, %c0_i32_0 : i32, i32
  }
  func.func @transform_5(%arg0: i32) -> (i32, i32) {
    %c0_i32 = arith.constant 0 : i32
    %c0_i32_0 = arith.constant 0 : i32
    return %arg0, %c0_i32 : i32, i32
  }
}

</mosaic_0001>

<bundles_post_ra>
// kernel: tpu_custom_call.1
= control target key start
LH: loop header
LB: loop body
LE: loop exit
PB: predicated region body
PF: predicated region fallthrough
CT: control target
= control target key end

     0   :  { %10 = vsyncpa [#allocation3], 0  ;;  %s2058_s0 = inlined_call_operand.hbm [shape: f32[8,339], index: 0, kind: input, shape index: {}]   ;;  %s2059_s1 = inlined_call_operand.hbm [shape: bf16[339,384], index: 1, kind: input, shape index: {}]   ;;  %s2060_s2 = inlined_call_operand.vmem [shape: f32[1,384], index: 2, kind: input, shape index: {}]   ;;  %s2061_s3 = inlined_call_operand.hbm [shape: bf16[384,384], index: 3, kind: input, shape index: {}]   ;;  %s2062_s4 = inlined_call_operand.vmem [shape: f32[1,384], index: 4, kind: input, shape index: {}]   ;;  %s2063_s5 = inlined_call_operand.hbm [shape: f32[8,384], index: 5, kind: output, shape index: {}]  }
   0x1   :  { %11 = vsyncpa [#allocation6], 0 }
   0x2   :  { %12 = vsyncpa [#allocation4], 0  ;;  %s1915_s18 = smov [#allocation5]   ;;  %s1821_s22 = scalar_lea.hbm %s2059_s1, 8256 }
   0x3   :  { %s28_s19 = sshll.u32 %s1915_s18, 4  ;;  %p1822_p0 = scmp.ne.s32.totalorder %s2059_s1, %s1821_s22  ;;  %s29_s19 = int_to_ptr.vmem [resolvable:$true] %s28_s19 }
   0x4   :  { %p1825_p1 = scmp.lt.u32.totalorder %s1821_s22, %s2059_s1 }
   0x6   :  { %p1827_p2 = pnand %p1825_p1, %p1822_p0 }
   0x8   :  { %1830 = shalt.err (!%p1827_p2)
}
   0x9   :  { %s1831_s27 = scalar_lea.vmem %s29_s19, 8256  ;;  %p1836_p4 = scmp.lt.s32.totalorder %s29_s19, %s29_s19 }
   0xa   :  { %p1832_p3 = scmp.ne.s32.totalorder %s29_s19, %s1831_s27  ;;  %p1837_p5 = scmp.lt.s32.totalorder %s1831_s27, %s1831_s27 }
   0xc   :  { %p1838_p6 = por %p1837_p5, %p1836_p4 }
   0xe   :  { %p1839_p7 = pnand %p1838_p6, %p1832_p3 }
  0x10   :  { %1842 = shalt.err (!%p1839_p7)
}
  0x11   :  { %s1916_s28 = smov 192   ;;  %s1917_s29 = smov 12  }
  0x12   :  { %34 = dma.hbm_to_vmem [thread:$0]  %s2059_s1, 8256, %s29_s19, [#allocation6], %s1916_s28, %s1916_s28, %s1917_s29  }
  0x13   :  { %s1918_s7 = smov [#allocation2]   ;;  %s1919_s9 = smov [#allocation7]  }
  0x14   :  { %s19_s8 = sshll.u32 %s1918_s7, 4  ;;  %s42_s10 = sshll.u32 %s1919_s9, 4  ;;  %s20_s8 = int_to_ptr.vmem [resolvable:$true] %s19_s8  ;;  %s43_s10 = int_to_ptr.vmem [resolvable:$true] %s42_s10 }
  0x15   :  { %s1843_s13 = scalar_lea.hbm %s2058_s0, 384 }
  0x16   :  { %p1844_p8 = scmp.ne.s32.totalorder %s2058_s0, %s1843_s13  ;;  %p1847_p9 = scmp.lt.u32.totalorder %s1843_s13, %s2058_s0 }
  0x18   :  { %p1849_p10 = pnand %p1847_p9, %p1844_p8 }
  0x1a   :  { %1852 = shalt.err (!%p1849_p10)
}
  0x1b   :  { %s1853_s1 = scalar_lea.vmem %s20_s8, 384  ;;  %p1858_p12 = scmp.lt.s32.totalorder %s20_s8, %s20_s8 }
  0x1c   :  { %p1854_p11 = scmp.ne.s32.totalorder %s20_s8, %s1853_s1  ;;  %p1859_p13 = scmp.lt.s32.totalorder %s1853_s1, %s1853_s1 }
  0x1e   :  { %p1860_p0 = por %p1859_p13, %p1858_p12 }
  0x20   :  { %p1861_p1 = pnand %p1860_p0, %p1854_p11 }
  0x22   :  { %1864 = shalt.err (!%p1861_p1)
}
  0x23   :  { %22 = dma.hbm_to_vmem [thread:$0]  %s2058_s0, 384, %s20_s8, [#allocation3]  }
  0x24   :  { %s1865_s22 = scalar_lea.hbm %s2061_s3, 9216 }
  0x25   :  { %p1866_p2 = scmp.ne.s32.totalorder %s2061_s3, %s1865_s22  ;;  %p1869_p3 = scmp.lt.u32.totalorder %s1865_s22, %s2061_s3 }
  0x27   :  { %p1871_p4 = pnand %p1869_p3, %p1866_p2 }
  0x29   :  { %1874 = shalt.err (!%p1871_p4)
}
  0x2a   :  { %s1875_s27 = scalar_lea.vmem %s43_s10, 9216  ;;  %p1880_p6 = scmp.lt.s32.totalorder %s43_s10, %s43_s10 }
  0x2b   :  { %p1876_p5 = scmp.ne.s32.totalorder %s43_s10, %s1875_s27  ;;  %p1881_p7 = scmp.lt.s32.totalorder %s1875_s27, %s1875_s27 }
  0x2d   :  { %p1882_p8 = por %p1881_p7, %p1880_p6 }
  0x2f   :  { %p1883_p9 = pnand %p1882_p8, %p1876_p5 }
  0x31   :  { %1886 = shalt.err (!%p1883_p9)
}
  0x32   :  { %48 = dma.hbm_to_vmem [thread:$0]  %s2061_s3, 9216, %s43_s10, [#allocation6], %s1916_s28, %s1916_s28, %s1917_s29  }
  0x33   :  { %1909 = dma.done.wait [#allocation3], 384  }
  0x34   :  { %1910 = vsyncadd [#allocation3], 4294966912 }
  0x35   :  { %1911 = dma.done.wait [#allocation6], 17472  }
  0x36   :  { %1912 = vsyncadd [#allocation6], 4294949824  ;;  %v1638_v0 = vld [vmem:[#allocation5 + $0x4] ss:$12 sps:$4 sm:$0xff]   ;;  %v1640_v1 = vld [vmem:[#allocation5] ss:$12 sps:$4 sm:$0xff]  }
  0x37   :  { %531 = vmatprep.subr.bf16.mxu0 %v1638_v0  ;;  %v1641_v2 = vld [vmem:[#allocation5 + $0x1c] ss:$12 sps:$4 sm:$0xff]   ;;  %v1643_v3 = vld [vmem:[#allocation5 + $0x18] ss:$12 sps:$4 sm:$0xff]   ;;  %v1644_v4 = vld [vmem:[#allocation5 + $0x34] ss:$12 sps:$4 sm:$0xff]  }
  0x38   :  { %532 = vmatpush1.bf16.msra.mxu0 %v1640_v1  ;;  %v1646_v5 = vld [vmem:[#allocation5 + $0x30] ss:$12 sps:$4 sm:$0xff]   ;;  %v1647_v6 = vld [vmem:[#allocation5 + $0x4c] ss:$12 sps:$4 sm:$0xff]   ;;  %v1649_v7 = vld [vmem:[#allocation5 + $0x48] ss:$12 sps:$4 sm:$0xff]  }
  0x39   :  { %533 = vmatprep.subr.bf16.mxu0 %v1641_v2  ;;  %v1650_v8 = vld [vmem:[#allocation5 + $0x64] ss:$12 sps:$4 sm:$0xff]   ;;  %v1652_v9 = vld [vmem:[#allocation5 + $0x60] ss:$12 sps:$4 sm:$0xff]   ;;  %v1653_v10 = vld [vmem:[#allocation5 + $0x7c] ss:$12 sps:$4 sm:$0xff]  }
  0x3a   :  { %v1673_v11 = vld [vmem:[#allocation5 + $0xc8] ss:$12 sps:$4 sm:$0xff]   ;;  %v1655_v13 = vld [vmem:[#allocation5 + $0x78] ss:$12 sps:$4 sm:$0xff]   ;;  %v1678_v14 = vld [vmem:[#allocation5 + $0xe0] ss:$12 sps:$4 sm:$0xff]  }
  0x3b   :  { %v1675_v12 = vld [vmem:[#allocation5 + $0x8] ss:$12 sps:$4 sm:$0xff]   ;;  %1520 = vmatprep.subr.bf16.mxu1 %v1673_v11  ;;  %v1680_v16 = vld [vmem:[#allocation5 + $0x20] ss:$12 sps:$4 sm:$0xff]   ;;  %v1658_v17 = vld [vmem:[#allocation5 + $0x90] ss:$12 sps:$4 sm:$0xff]  }
  0x3c   :  { %534 = vmatpush1.bf16.msra.mxu0 %v1643_v3  ;;  %1521 = vmatpush3.bf16.msra.mxu1 %v1675_v12  ;;  %v1656_v15 = vld [vmem:[#allocation5 + $0x94] ss:$12 sps:$4 sm:$0xff]   ;;  %v1659_v18 = vld [vmem:[#allocation5 + $0xac] ss:$12 sps:$4 sm:$0xff]   ;;  %v1688_v22 = vld [vmem:[#allocation5 + $0x110] ss:$12 sps:$4 sm:$0xff]  }
  0x3d   :  { %535 = vmatprep.subr.bf16.mxu0 %v1644_v4  ;;  %1522 = vmatprep.subr.bf16.mxu1 %v1678_v14  ;;  %v1683_v19 = vld [vmem:[#allocation5 + $0xf8] ss:$12 sps:$4 sm:$0xff]   ;;  %v1661_v21 = vld [vmem:[#allocation5 + $0xa8] ss:$12 sps:$4 sm:$0xff]   ;;  %v1690_v23 = vld [vmem:[#allocation5 + $0x50] ss:$12 sps:$4 sm:$0xff]  }
  0x3e   :  { %v1685_v20 = vld [vmem:[#allocation5 + $0x38] ss:$12 sps:$4 sm:$0xff]   ;;  %v1693_v25 = vld [vmem:[#allocation5 + $0x128] ss:$12 sps:$4 sm:$0xff]   ;;  %v1664_v26 = vld [vmem:[#allocation5 + $0xc0] ss:$12 sps:$4 sm:$0xff]  }
  0x3f   :  { %v1662_v24 = vld [vmem:[#allocation5 + $0xc4] ss:$12 sps:$4 sm:$0xff]   ;;  %v1695_v27 = vld [vmem:[#allocation5 + $0x68] ss:$12 sps:$4 sm:$0xff]   ;;  %v1699_v31 = vld [vmem:[#allocation5 + $0x140] ss:$12 sps:$4 sm:$0xff]  }
  0x40   :  { %536 = vmatpush1.bf16.msra.mxu0 %v1646_v5  ;;  %1523 = vmatpush3.bf16.msra.mxu1 %v1680_v16  ;;  %v62_v28 = vld [vmem:[#allocation2 + $0x8] sm:$0xff]  ;;  %v1665_v29 = vld [vmem:[#allocation5 + $0xdc] ss:$12 sps:$4 sm:$0xff]   ;;  %v1667_v32 = vld [vmem:[#allocation5 + $0xd8] ss:$12 sps:$4 sm:$0xff]   ;;  %v1920_v48 = vmov 0.0  }
  0x41   :  { %537 = vmatprep.subr.bf16.mxu0 %v1647_v6  ;;  %1524 = vmatprep.subr.bf16.mxu1 %v1683_v19  ;;  %v65_v30 = vpack.c.bf16 %v62_v28, %v62_v28  ;;  %v1700_v33 = vld [vmem:[#allocation5 + $0x80] ss:$12 sps:$4 sm:$0xff]   ;;  %v1704_v35 = vld [vmem:[#allocation5 + $0x158] ss:$12 sps:$4 sm:$0xff]   ;;  %v1670_v36 = vld [vmem:[#allocation5 + $0xf0] ss:$12 sps:$4 sm:$0xff]  }
  0x42   :  { %v1668_v34 = vld [vmem:[#allocation5 + $0xf4] ss:$12 sps:$4 sm:$0xff]   ;;  %v1671_v37 = vld [vmem:[#allocation5 + $0x10c] ss:$12 sps:$4 sm:$0xff]   ;;  %v1709_v39 = vld [vmem:[#allocation5 + $0x170] ss:$12 sps:$4 sm:$0xff]  }
  0x43   :  { %563 = vmatprep.mubr.bf16.mxu0 %v65_v30  ;;  %645 = vmatprep.mubr.bf16.mxu1 %v65_v30  ;;  %v1705_v38 = vld [vmem:[#allocation5 + $0x98] ss:$12 sps:$4 sm:$0xff]   ;;  %v1674_v40 = vld [vmem:[#allocation5 + $0x108] ss:$12 sps:$4 sm:$0xff]   ;;  %v1710_v41 = vld [vmem:[#allocation5 + $0xb0] ss:$12 sps:$4 sm:$0xff]  }
  0x44   :  { %538 = vmatpush1.bf16.msra.mxu0 %v1649_v7  ;;  %1525 = vmatpush3.bf16.msra.mxu1 %v1685_v20  ;;  %v1676_v42 = vld [vmem:[#allocation5 + $0x124] ss:$12 sps:$4 sm:$0xff]   ;;  %v61_v43 = vld [vmem:[#allocation2] sm:$0xff]  ;;  %v1686_v51 = vld [vmem:[#allocation5 + $0x154] ss:$12 sps:$4 sm:$0xff]   ;;  %vm1921_vm0 = vmmov 0  }
  0x45   :  { %539 = vmatprep.subr.bf16.mxu0 %v1650_v8  ;;  %1526 = vmatprep.subr.bf16.mxu1 %v1688_v22  ;;  %v1679_v44 = vld [vmem:[#allocation5 + $0x120] ss:$12 sps:$4 sm:$0xff]   ;;  %v1714_v45 = vld [vmem:[#allocation5 + $0x188] ss:$12 sps:$4 sm:$0xff]   ;;  %v64_v47 = vpack.c.bf16 %v61_v43, %v61_v43  ;;  %v1684_v49 = vld [vmem:[#allocation5 + $0x138] ss:$12 sps:$4 sm:$0xff]  }
  0x46   :  { %v1681_v46 = vld [vmem:[#allocation5 + $0x13c] ss:$12 sps:$4 sm:$0xff]   ;;  %v1718_v50 = vld [vmem:[#allocation5 + $0x1a0] ss:$12 sps:$4 sm:$0xff]   ;;  %v1721_v53 = vld [vmem:[#allocation5 + $0x1b8] ss:$12 sps:$4 sm:$0xff]  }
  0x47   :  { %v1689_v52 = vld [vmem:[#allocation5 + $0x150] ss:$12 sps:$4 sm:$0xff]   ;;  %v1691_v54 = vld [vmem:[#allocation5 + $0x16c] ss:$12 sps:$4 sm:$0xff]   ;;  %v1694_v55 = vld [vmem:[#allocation5 + $0x168] ss:$12 sps:$4 sm:$0xff]  }
  0x48   :  { %540 = vmatpush1.bf16.msra.mxu0 %v1652_v9  ;;  %1527 = vmatpush3.bf16.msra.mxu1 %v1690_v23  ;;  %vm518_vm1 = vcmask 1040384   ;;  %v1722_v56 = vld [vmem:[#allocation5 + $0x1d0] ss:$12 sps:$4 sm:$0xff]   ;;  %vm519_vm2 = vcmask 1041408   ;;  %v1922_v58 = vmov 65535   ;;  %v1923_v2 = vmov 0  }
  0x49   :  { %541 = vmatprep.subr.bf16.mxu0 %v1653_v10  ;;  %1528 = vmatprep.subr.bf16.mxu1 %v1693_v25  ;;  %v1698_v57 = vld [vmem:[#allocation5 + $0x184] ss:$12 sps:$4 sm:$0xff]   ;;  %v520_v59 = vsel %vm518_vm1, 4294967295, %v1922_v58  ;;  %v1696_v60 = vld [vmem:[#allocation5 + $0x180] ss:$12 sps:$4 sm:$0xff]   ;;  %v63_v7 = vld [vmem:[#allocation2 + $0x10] sm:$0xff] }
  0x4a   :  { %v1724_v61 = vld [vmem:[#allocation5 + $0x200] ss:$0 sps:$4 sm:$0x33]   ;;  %v1703_v62 = vld [vmem:[#allocation5 + $0x19c] ss:$12 sps:$4 sm:$0xff]   ;;  %v521_v0 = vsel %vm519_vm2, %v520_v59, 0  ;;  %v66_v11 = vpack.c.bf16 %v63_v7, %v63_v7 }
  0x4b   :  { %v1723_v63 = vld [vmem:[#allocation5 + $0x1e8] ss:$12 sps:$4 sm:$0xff]   ;;  %v1701_v1 = vld [vmem:[#allocation5 + $0x198] ss:$12 sps:$4 sm:$0xff]   ;;  %v529_v4 = vand.u32 %v1724_v61, %v521_v0  ;;  %v1706_v5 = vld [vmem:[#allocation5 + $0x1b0] ss:$12 sps:$4 sm:$0xff]  }
  0x4c   :  { %542 = vmatpush1.bf16.msra.mxu0 %v1655_v13  ;;  %1529 = vmatpush3.bf16.msra.mxu1 %v1695_v27  ;;  %v1708_v3 = vld [vmem:[#allocation5 + $0x1b4] ss:$12 sps:$4 sm:$0xff]   ;;  %v1713_v8 = vld [vmem:[#allocation5 + $0x1cc] ss:$12 sps:$4 sm:$0xff]   ;;  %vm514_vm3 = vcmask 678912   ;;  %s1924_s6 = smov [#allocation8]  }
  0x4d   :  { %543 = vmatprep.subr.bf16.mxu0 %v1656_v15  ;;  %1530 = vmatprep.subr.bf16.mxu1 %v1699_v31  ;;  %v1727_v6 = vld [vmem:[#allocation7 + $0x4] ss:$12 sps:$4 sm:$0xff]   ;;  %v151_v9 = vld [vmem:[#allocation5 + $0x1f8] sm:$0x33]  ;;  %v1725_v10 = vld [vmem:[#allocation7] ss:$12 sps:$4 sm:$0xff]  }
  0x4e   :  { %v1730_v12 = vld [vmem:[#allocation7 + $0x1c] ss:$12 sps:$4 sm:$0xff]   ;;  %v1711_v13 = vld [vmem:[#allocation5 + $0x1c8] ss:$12 sps:$4 sm:$0xff]   ;;  %v1717_v14 = vld [vmem:[#allocation5 + $0x1e4] ss:$12 sps:$4 sm:$0xff]   ;;  %v1444_v15 = vcombine.high %v151_v9, %v151_v9  ;;  %v1443_v19 = vcombine.low %v151_v9, %v151_v9  ;;  %v155_v9 = vlaneseq }
  0x4f   :  { %v1728_v16 = vld [vmem:[#allocation7 + $0x18] ss:$12 sps:$4 sm:$0xff]   ;;  %v1734_v23 = vld [vmem:[#allocation7 + $0x48] ss:$12 sps:$4 sm:$0xff]   ;;  %v1737_v28 = vld [vmem:[#allocation7 + $0x60] ss:$12 sps:$4 sm:$0xff]  }
  0x50   :  { %544 = vmatpush1.bf16.msra.mxu0 %v1658_v17  ;;  %1531 = vmatpush3.bf16.msra.mxu1 %v1700_v33  ;;  %v1733_v17 = vld [vmem:[#allocation7 + $0x34] ss:$12 sps:$4 sm:$0xff]   ;;  %v526_v20 = vand.u32 %v1444_v15, %v521_v0  ;;  %v1736_v22 = vld [vmem:[#allocation7 + $0x4c] ss:$12 sps:$4 sm:$0xff]   ;;  %v523_v25 = vand.u32 %v1443_v19, %v521_v0  ;;  %v1742_v30 = vld [vmem:[#allocation7 + $0x7c] ss:$12 sps:$4 sm:$0xff]  }
  0x51   :  { %545 = vmatprep.subr.bf16.mxu0 %v1659_v18  ;;  %1532 = vmatprep.subr.bf16.mxu1 %v1704_v35  ;;  %v1715_v18 = vld [vmem:[#allocation5 + $0x1e0] ss:$12 sps:$4 sm:$0xff]   ;;  %v1758_v31 = vld [vmem:[#allocation7 + $0x20] ss:$12 sps:$4 sm:$0xff]   ;;  %v1762_v33 = vld [vmem:[#allocation7 + $0xf8] ss:$12 sps:$4 sm:$0xff]  }
  0x52   :  { %v1753_v27 = vld [vmem:[#allocation7 + $0x8] ss:$12 sps:$4 sm:$0xff]   ;;  %v1763_v35 = vld [vmem:[#allocation7 + $0x38] ss:$12 sps:$4 sm:$0xff]   ;;  %s1370_s7 = sshll.u32 %s1924_s6, 4  ;;  %s1371_s7 = int_to_ptr.vmem [resolvable:$true] %s1370_s7 }
  0x53   :  { %v1773_v43 = vld [vmem:[#allocation7 + $0x68] ss:$12 sps:$4 sm:$0xff]   ;;  %v1782_v59 = vld [vmem:[#allocation7 + $0x158] ss:$12 sps:$4 sm:$0xff]   ;;  %p1892_p11 = scmp.lt.s32.totalorder %s1371_s7, %s1371_s7 }
  0x54   :  { %546 = vmatpush1.bf16.msra.mxu0 %v1661_v21  ;;  %1533 = vmatpush3.bf16.msra.mxu1 %v1705_v38  ;;  %v1731_v21 = vld [vmem:[#allocation7 + $0x30] ss:$12 sps:$4 sm:$0xff]   ;;  %v1748_v38 = vld [vmem:[#allocation7 + $0xac] ss:$12 sps:$4 sm:$0xff]   ;;  %v1781_v58 = vld [vmem:[#allocation7 + $0x154] ss:$12 sps:$4 sm:$0xff]  }
  0x55   :  { %547 = vmatprep.subr.bf16.mxu0 %v1662_v24  ;;  %1534 = vmatprep.subr.bf16.mxu1 %v1709_v39  ;;  %v1752_v24 = vld [vmem:[#allocation7 + $0xc8] ss:$12 sps:$4 sm:$0xff]   ;;  %v1768_v39 = vld [vmem:[#allocation7 + $0x50] ss:$12 sps:$4 sm:$0xff]   ;;  %v1783_v61 = vld [vmem:[#allocation7 + $0x98] ss:$12 sps:$4 sm:$0xff]  }
  0x56   :  { %v1784_v0 = vld [vmem:[#allocation7 + $0x168] ss:$12 sps:$4 sm:$0xff]  }
  0x58   :  { %548 = vmatpush1.bf16.msra.mxu0 %v1664_v26  ;;  %1535 = vmatpush3.bf16.msra.mxu1 %v1710_v41  ;;  %v1739_v26 = vld [vmem:[#allocation7 + $0x64] ss:$12 sps:$4 sm:$0xff]   ;;  %v1772_v41 = vld [vmem:[#allocation7 + $0x128] ss:$12 sps:$4 sm:$0xff]  }
  0x59   :  { %549 = vmatprep.subr.bf16.mxu0 %v1665_v29  ;;  %1580 = vmatprep.subr.bf16.mxu1 %v1920_v48  ;;  %v1757_v29 = vld [vmem:[#allocation7 + $0xe0] ss:$12 sps:$4 sm:$0xff]  }
  0x5b   :  { %646 = vmatmul.mubr.bf16.vlgmr.msra.gmra.mrb[0].mxu1 %v64_v47 }
  0x5c   :  { %550 = vmatpush1.bf16.msra.mxu0 %v1667_v32  ;;  %1581 = vmatpush3.bf16.msra.mxu1 %v1714_v45  ;;  %v1740_v32 = vld [vmem:[#allocation7 + $0x78] ss:$12 sps:$4 sm:$0xff]   ;;  %v1777_v45 = vld [vmem:[#allocation7 + $0x140] ss:$12 sps:$4 sm:$0xff]  }
  0x5d   :  { %551 = vmatprep.subr.bf16.mxu0 %v1668_v34  ;;  %1582 = vmatprep.subr.bf16.mxu1 %v1920_v48  ;;  %v1745_v34 = vld [vmem:[#allocation7 + $0x94] ss:$12 sps:$4 sm:$0xff]  }
  0x5e   :  { %1592 = vmatprep.mubr.msk.bf16.mxu1 %vm1921_vm0, %v1920_v48 }
  0x60   :  { %552 = vmatpush1.bf16.msra.mxu0 %v1670_v36  ;;  %1583 = vmatpush3.bf16.msra.mxu1 %v1718_v50  ;;  %v1743_v36 = vld [vmem:[#allocation7 + $0x90] ss:$12 sps:$4 sm:$0xff]   ;;  %v1761_v50 = vld [vmem:[#allocation7 + $0xf4] ss:$12 sps:$4 sm:$0xff]  }
  0x61   :  { %553 = vmatprep.subr.bf16.mxu0 %v1671_v37  ;;  %1584 = vmatprep.subr.bf16.mxu1 %v1920_v48  ;;  %v1767_v37 = vld [vmem:[#allocation7 + $0x110] ss:$12 sps:$4 sm:$0xff]  }
  0x64   :  { %554 = vmatpush1.bf16.msra.mxu0 %v1674_v40  ;;  %1585 = vmatpush3.bf16.msra.mxu1 %v1721_v53  ;;  %v1746_v40 = vld [vmem:[#allocation7 + $0xa8] ss:$12 sps:$4 sm:$0xff]  }
  0x65   :  { %555 = vmatprep.subr.bf16.mxu0 %v1676_v42  ;;  %1586 = vmatprep.subr.bf16.mxu1 %v1920_v48  ;;  %v1751_v42 = vld [vmem:[#allocation7 + $0xc4] ss:$12 sps:$4 sm:$0xff]   ;;  %v1764_v53 = vld [vmem:[#allocation7 + $0x108] ss:$12 sps:$4 sm:$0xff]  }
  0x68   :  { %556 = vmatpush1.bf16.msra.mxu0 %v1679_v44  ;;  %1587 = vmatpush3.bf16.msra.mxu1 %v1722_v56  ;;  %v1749_v44 = vld [vmem:[#allocation7 + $0xc0] ss:$12 sps:$4 sm:$0xff]   ;;  %v1776_v56 = vld [vmem:[#allocation7 + $0x13c] ss:$12 sps:$4 sm:$0xff]  }
  0x69   :  { %557 = vmatprep.subr.bf16.mxu0 %v1681_v46  ;;  %1588 = vmatprep.subr.bf16.mxu1 %v1920_v48  ;;  %v1756_v46 = vld [vmem:[#allocation7 + $0xdc] ss:$12 sps:$4 sm:$0xff]  }
  0x6c   :  { %558 = vmatpush1.bf16.msra.mxu0 %v1684_v49  ;;  %1589 = vmatpush3.bf16.msra.mxu1 %v1723_v63  ;;  %v1754_v49 = vld [vmem:[#allocation7 + $0xd8] ss:$12 sps:$4 sm:$0xff]   ;;  %v1787_v63 = vld [vmem:[#allocation7 + $0x170] ss:$12 sps:$4 sm:$0xff]  }
  0x6d   :  { %559 = vmatprep.subr.bf16.mxu0 %v1686_v51  ;;  %1590 = vmatprep.subr.bf16.mxu1 %v1920_v48  ;;  %v1759_v51 = vld [vmem:[#allocation7 + $0xf0] ss:$12 sps:$4 sm:$0xff]  }
  0x70   :  { %560 = vmatpush1.bf16.msra.mxu0 %v1689_v52  ;;  %1591 = vmatpush3.bf16.msra.mxu1 %v529_v4  ;;  %v1766_v52 = vld [vmem:[#allocation7 + $0x10c] ss:$12 sps:$4 sm:$0xff]  }
  0x71   :  { %561 = vmatprep.subr.bf16.mxu0 %v1691_v54  ;;  %1199 = vmatprep.subr.bf16.mxu1 %v1727_v6  ;;  %v1771_v54 = vld [vmem:[#allocation7 + $0x124] ss:$12 sps:$4 sm:$0xff]  }
  0x73   :  { %1593 = vmatmul.mubr.msk.bf16.vlgmr.msra.gmra.mrb[4].mxu1 %vm514_vm3, %v66_v11 }
  0x74   :  { %562 = vmatpush1.bf16.msra.mxu0 %v1694_v55  ;;  %1200 = vmatpush1.bf16.msra.mxu1 %v1725_v10  ;;  %v1769_v55 = vld [vmem:[#allocation7 + $0x120] ss:$12 sps:$4 sm:$0xff]   ;;  %v2009_v10 = vshrl.u32 %v155_v9, 7 }
  0x75   :  { %572 = vmatprep.subr.bf16.mxu0 %v1698_v57  ;;  %1201 = vmatprep.subr.bf16.mxu1 %v1730_v12  ;;  %v1774_v57 = vld [vmem:[#allocation7 + $0x138] ss:$12 sps:$4 sm:$0xff]  }
  0x76   :  { %v153_v12 = vld [vmem:[%s2060_s2] sm:$0x7] }
  0x77   :  { %564 = vmatmul.mubr.bf16.vlgmr.msra.gmra.mrb[0].mxu0 %v64_v47  ;;  %v1778_v47 = vld [vmem:[#allocation7 + $0x80] ss:$12 sps:$4 sm:$0xff]  }
  0x78   :  { %573 = vmatpush1.bf16.msra.mxu0 %v1696_v60  ;;  %604 = vmatprep.mubr.bf16.mxu0 %v1923_v2  ;;  %v1779_v60 = vld [vmem:[#allocation7 + $0x150] ss:$12 sps:$4 sm:$0xff]  }
  0x79   :  { %574 = vmatprep.subr.bf16.mxu0 %v1703_v62  ;;  %1202 = vmatpush1.bf16.msra.mxu1 %v1728_v16  ;;  %v1786_v62 = vld [vmem:[#allocation7 + $0x16c] ss:$12 sps:$4 sm:$0xff]  }
  0x7a   :  { %1203 = vmatprep.subr.bf16.mxu1 %v1733_v17 }
  0x7c   :  { %575 = vmatpush1.bf16.msra.mxu0 %v1701_v1  ;;  %v1788_v1 = vld [vmem:[#allocation7 + $0xb0] ss:$12 sps:$4 sm:$0xff]  }
  0x7d   :  { %576 = vmatprep.subr.bf16.mxu0 %v1708_v3  ;;  %1204 = vmatpush1.bf16.msra.mxu1 %v1731_v21  ;;  %v1791_v3 = vld [vmem:[#allocation7 + $0x184] ss:$12 sps:$4 sm:$0xff]   ;;  %v161_v21 = vsub.s32 1, %v2009_v10 }
  0x7e   :  { %1205 = vmatprep.subr.bf16.mxu1 %v1736_v22 }
  0x80   :  { %577 = vmatpush1.bf16.msra.mxu0 %v1706_v5 }
  0x81   :  { %578 = vmatprep.subr.bf16.mxu0 %v1713_v8  ;;  %1206 = vmatpush1.bf16.msra.mxu1 %v1734_v23  ;;  %v162_v23 = vrot.slane %v153_v12, %v161_v21 }
  0x82   :  { %1207 = vmatprep.subr.bf16.mxu1 %v1739_v26 }
  0x84   :  { %579 = vmatpush1.bf16.msra.mxu0 %v1711_v13 }
  0x85   :  { %580 = vmatprep.subr.bf16.mxu0 %v1717_v14  ;;  %1208 = vmatpush1.bf16.msra.mxu1 %v1737_v28 }
  0x86   :  { %1209 = vmatprep.subr.bf16.mxu1 %v1742_v30 }
  0x88   :  { %581 = vmatpush1.bf16.msra.mxu0 %v1715_v18 }
  0x89   :  { %582 = vmatprep.subr.bf16.mxu0 %v526_v20  ;;  %1210 = vmatpush1.bf16.msra.mxu1 %v1740_v32  ;;  %v157_v20 = vsub.s32 0, %v2009_v10 }
  0x8a   :  { %1211 = vmatprep.subr.bf16.mxu1 %v1745_v34 }
  0x8b   :  { %v158_v22 = vrot.slane %v153_v12, %v157_v20 }
  0x8c   :  { %583 = vmatpush1.bf16.msra.mxu0 %v523_v25 }
  0x8d   :  { %1549 = vmatprep.subr.bf16.mxu0 %v1752_v24  ;;  %1212 = vmatpush1.bf16.msra.mxu1 %v1743_v36  ;;  %v1792_v36 = vld [vmem:[#allocation7 + $0x188] ss:$12 sps:$4 sm:$0xff]  }
  0x8e   :  { %1213 = vmatprep.subr.bf16.mxu1 %v1748_v38  ;;  %v1795_v38 = vld [vmem:[#allocation7 + $0x19c] ss:$12 sps:$4 sm:$0xff]  }
  0x8f   :  { %1446 = vmatmul.mubr.msk.bf16.vlgmr.msra.gmra.mrb[0].mxu0 %vm514_vm3, %v66_v11  ;;  %v165_v11 = vsub.s32 2, %v2009_v10 }
  0x90   :  { %1550 = vmatpush3.bf16.msra.mxu0 %v1753_v27 }
  0x91   :  { %1551 = vmatprep.subr.bf16.mxu0 %v1757_v29  ;;  %1214 = vmatpush1.bf16.msra.mxu1 %v1746_v40  ;;  %v166_v13 = vrot.slane %v153_v12, %v165_v11  ;;  %v1796_v40 = vld [vmem:[#allocation7 + $0x1a0] ss:$12 sps:$4 sm:$0xff]  }
  0x92   :  { %1215 = vmatprep.subr.bf16.mxu1 %v1751_v42  ;;  %v1797_v42 = vld [vmem:[#allocation7 + $0x1b0] ss:$12 sps:$4 sm:$0xff]  }
  0x94   :  { %1552 = vmatpush3.bf16.msra.mxu0 %v1758_v31 }
  0x95   :  { %1553 = vmatprep.subr.bf16.mxu0 %v1762_v33  ;;  %1216 = vmatpush1.bf16.msra.mxu1 %v1749_v44  ;;  %v1803_v44 = vld [vmem:[#allocation7 + $0x1cc] ss:$12 sps:$4 sm:$0xff]  }
  0x96   :  { %1217 = vmatprep.subr.bf16.mxu1 %v1756_v46  ;;  %v1804_v46 = vld [vmem:[#allocation7 + $0x1d0] ss:$12 sps:$4 sm:$0xff]  }
  0x98   :  { %1554 = vmatpush3.bf16.msra.mxu0 %v1763_v35  ;;  %v1789_v35 = vld [vmem:[#allocation7 + $0x180] ss:$12 sps:$4 sm:$0xff]  }
  0x99   :  { %1555 = vmatprep.subr.bf16.mxu0 %v1767_v37  ;;  %1218 = vmatpush1.bf16.msra.mxu1 %v1754_v49  ;;  %v1808_v49 = vld [vmem:[#allocation7 + $0x1e8] ss:$12 sps:$4 sm:$0xff]  }
  0x9a   :  { %1219 = vmatprep.subr.bf16.mxu1 %v1761_v50  ;;  %v1811_v50 = vld [vmem:[#allocation7 + $0x1fc] ss:$12 sps:$4 sm:$0xff]  }
  0x9c   :  { %1556 = vmatpush3.bf16.msra.mxu0 %v1768_v39  ;;  %v1793_v39 = vld [vmem:[#allocation7 + $0x198] ss:$12 sps:$4 sm:$0xff]  }
  0x9d   :  { %1557 = vmatprep.subr.bf16.mxu0 %v1772_v41  ;;  %1220 = vmatpush1.bf16.msra.mxu1 %v1759_v51  ;;  %v1799_v41 = vld [vmem:[#allocation7 + $0x1b4] ss:$12 sps:$4 sm:$0xff]   ;;  %v1809_v51 = vld [vmem:[#allocation7 + $0x1f8] ss:$12 sps:$4 sm:$0xff]  }
  0x9e   :  { %1221 = vmatprep.subr.bf16.mxu1 %v1766_v52  ;;  %v1812_v52 = vld [vmem:[#allocation7 + $0x200] ss:$12 sps:$4 sm:$0xff]  }
  0xa0   :  { %1558 = vmatpush3.bf16.msra.mxu0 %v1773_v43  ;;  %v1800_v43 = vld [vmem:[#allocation7 + $0x1b8] ss:$12 sps:$4 sm:$0xff]  }
  0xa1   :  { %1559 = vmatprep.subr.bf16.mxu0 %v1777_v45  ;;  %1222 = vmatpush1.bf16.msra.mxu1 %v1764_v53  ;;  %v1801_v45 = vld [vmem:[#allocation7 + $0x1c8] ss:$12 sps:$4 sm:$0xff]  }
  0xa2   :  { %1223 = vmatprep.subr.bf16.mxu1 %v1771_v54  ;;  %v1815_v53 = vld [vmem:[#allocation7 + $0x214] ss:$12 sps:$4 sm:$0xff]   ;;  %v1813_v54 = vld [vmem:[#allocation7 + $0x210] ss:$12 sps:$4 sm:$0xff]  }
  0xa4   :  { %1560 = vmatpush3.bf16.msra.mxu0 %v1778_v47  ;;  %v1807_v47 = vld [vmem:[#allocation7 + $0x1e4] ss:$12 sps:$4 sm:$0xff]  }
  0xa5   :  { %1224 = vmatpush1.bf16.msra.mxu1 %v1769_v55  ;;  %1561 = vmatprep.subr.bf16.mxu0 %v1782_v59  ;;  %v1816_v55 = vld [vmem:[#allocation7 + $0x218] ss:$12 sps:$4 sm:$0xff]   ;;  %v1820_v59 = vld [vmem:[#allocation7 + $0x230] ss:$12 sps:$4 sm:$0xff]  }
  0xa6   :  { %1225 = vmatprep.subr.bf16.mxu1 %v1776_v56 }
  0xa8   :  { %1562 = vmatpush3.bf16.msra.mxu0 %v1783_v61 }
  0xa9   :  { %1226 = vmatpush1.bf16.msra.mxu1 %v1774_v57  ;;  %1563 = vmatprep.subr.bf16.mxu0 %v1787_v63  ;;  %v1819_v57 = vld [vmem:[#allocation7 + $0x22c] ss:$12 sps:$4 sm:$0xff]  }
  0xaa   :  { %1227 = vmatprep.subr.bf16.mxu1 %v1781_v58  ;;  %v1817_v58 = vld [vmem:[#allocation7 + $0x228] ss:$12 sps:$4 sm:$0xff]  }
  0xac   :  { %1564 = vmatpush3.bf16.msra.mxu0 %v1788_v1 }
  0xad   :  { %1228 = vmatpush1.bf16.msra.mxu1 %v1779_v60  ;;  %1596 = vmatprep.subr.bf16.mxu0 %v1920_v48 }
  0xae   :  { %1229 = vmatprep.subr.bf16.mxu1 %v1786_v62 }
  0xb1   :  { %1230 = vmatpush1.bf16.msra.mxu1 %v1784_v0 }
  0xb2   :  { %1240 = vmatprep.subr.bf16.mxu1 %v1791_v3 }
 0x12e   :  { %v1536_v4 = vpop.f32.mrb[0].mxu1 }
 0x12f   :  { %v1537_v5 = vpop.f32.mrb[1].mxu1 }
 0x130   :  { %v1538_v6 = vadd.f32 %v1537_v5, %v1536_v4  ;;  %v1539_v7 = vpop.f32.mrb[2].mxu1  ;;  %v798_v4 = vld [vmem:[%s2062_s4] sm:$0x7]  ;;  %s1887_s4 = scalar_lea.vmem %s1371_s7, 384 }
 0x131   :  { %v1540_v8 = vpop.f32.mrb[3].mxu1  ;;  %v811_v5 = vrot.slane %v798_v4, %v165_v11  ;;  %p1888_p10 = scmp.ne.s32.totalorder %s1371_s7, %s1887_s4  ;;  %p1893_p12 = scmp.lt.s32.totalorder %s1887_s4, %s1887_s4 }
 0x132   :  { %v648_v14 = vadd.f32 %v1538_v6, %v166_v13  ;;  %v807_v6 = vrot.slane %v798_v4, %v161_v21 }
 0x133   :  { %p1894_p13 = por %p1893_p12, %p1892_p11 }
 0x135   :  { %p1895_p0 = pnand %p1894_p13, %p1888_p10 }
 0x146   :  { %v687_v15 = vpop.f32.mrb[4].mxu1 }
 0x147   :  { %v2017_v16 = vadd.f32 %v687_v15, %v648_v14  ;;  %v1594_v17 = vpop.f32.mrb[5].mxu1 }
 0x148   :  { %v690_v18 = vpop.f32.mrb[6].mxu1 }
 0x149   :  { %v1595_v19 = vpop.f32.mrb[7].mxu1  ;;  %v695_v56 = vmul.f32 0.01, %v2017_v16 }
 0x14b   :  { %v698_v60 = vmax.f32 %v2017_v16, %v695_v56 }
 0x14d   :  { %v701_v61 = vpack.c.bf16 %v698_v60, %v698_v60 }
 0x162   :  { %v606_v24 = vpop.f32.mrb[0].mxu0 }
 0x163   :  { %v1616_v25 = vadd.f32 %v606_v24, %v158_v22  ;;  %v608_v26 = vpop.f32.mrb[1].mxu0 }
 0x164   :  { %v1617_v27 = vadd.f32 %v608_v26, %v162_v23  ;;  %v610_v28 = vpop.f32.mrb[2].mxu0 }
 0x165   :  { %v693_v29 = vmul.f32 0.01, %v1616_v25  ;;  %v611_v30 = vpop.f32.mrb[3].mxu0 }
 0x166   :  { %v694_v31 = vmul.f32 0.01, %v1617_v27 }
 0x167   :  { %v696_v32 = vmax.f32 %v1616_v25, %v693_v29 }
 0x168   :  { %v697_v33 = vmax.f32 %v1617_v27, %v694_v31 }
 0x169   :  { %v699_v37 = vpack.c.bf16 %v696_v32, %v696_v32 }
 0x16a   :  { %v700_v34 = vpack.c.bf16 %v697_v33, %v697_v33 }
 0x16c   :  { %1231 = vmatprep.mubr.bf16.mxu1 %v700_v34  ;;  %1313 = vmatprep.mubr.bf16.mxu0 %v700_v34 }
 0x16d   :  { %1232 = vmatmul.mubr.bf16.vlgmr.msra.gmra.mrb[8].mxu1 %v699_v37  ;;  %1314 = vmatmul.mubr.bf16.vlgmr.msra.gmra.mrb[4].mxu0 %v699_v37 }
 0x16e   :  { %1241 = vmatpush1.bf16.msra.mxu1 %v1789_v35  ;;  %1597 = vmatpush3.bf16.msra.mxu0 %v1792_v36 }
 0x16f   :  { %1242 = vmatprep.subr.bf16.mxu1 %v1795_v38  ;;  %1598 = vmatprep.subr.bf16.mxu0 %v1920_v48 }
 0x170   :  { %1272 = vmatprep.mubr.bf16.mxu1 %v1923_v2  ;;  %1612 = vmatprep.mubr.msk.bf16.mxu0 %vm1921_vm0, %v1920_v48  ;;  %v1805_v2 = vld [vmem:[#allocation7 + $0x1e0] ss:$12 sps:$4 sm:$0xff]  }
 0x172   :  { %1243 = vmatpush1.bf16.msra.mxu1 %v1793_v39  ;;  %1599 = vmatpush3.bf16.msra.mxu0 %v1796_v40 }
 0x173   :  { %1244 = vmatprep.subr.bf16.mxu1 %v1799_v41  ;;  %1600 = vmatprep.subr.bf16.mxu0 %v1920_v48 }
 0x176   :  { %1245 = vmatpush1.bf16.msra.mxu1 %v1797_v42  ;;  %1601 = vmatpush3.bf16.msra.mxu0 %v1800_v43 }
 0x177   :  { %1246 = vmatprep.subr.bf16.mxu1 %v1803_v44  ;;  %1602 = vmatprep.subr.bf16.mxu0 %v1920_v48 }
 0x17a   :  { %1247 = vmatpush1.bf16.msra.mxu1 %v1801_v45  ;;  %1603 = vmatpush3.bf16.msra.mxu0 %v1804_v46 }
 0x17b   :  { %1248 = vmatprep.subr.bf16.mxu1 %v1807_v47  ;;  %1604 = vmatprep.subr.bf16.mxu0 %v1920_v48 }
 0x17e   :  { %1249 = vmatpush1.bf16.msra.mxu1 %v1805_v2  ;;  %1605 = vmatpush3.bf16.msra.mxu0 %v1808_v49 }
 0x17f   :  { %1250 = vmatprep.subr.bf16.mxu1 %v1811_v50  ;;  %1606 = vmatprep.subr.bf16.mxu0 %v1920_v48 }
 0x182   :  { %1251 = vmatpush1.bf16.msra.mxu1 %v1809_v51  ;;  %1607 = vmatpush3.bf16.msra.mxu0 %v1812_v52 }
 0x183   :  { %1252 = vmatprep.subr.bf16.mxu1 %v1815_v53  ;;  %1608 = vmatprep.subr.bf16.mxu0 %v1920_v48 }
 0x186   :  { %1253 = vmatpush1.bf16.msra.mxu1 %v1813_v54  ;;  %1609 = vmatpush3.bf16.msra.mxu0 %v1816_v55 }
 0x187   :  { %1254 = vmatprep.subr.bf16.mxu1 %v1819_v57  ;;  %1610 = vmatprep.subr.bf16.mxu0 %v1920_v48  ;;  %v803_v48 = vrot.slane %v798_v4, %v157_v20 }
 0x18a   :  { %1255 = vmatpush1.bf16.msra.mxu1 %v1817_v58  ;;  %1611 = vmatpush3.bf16.msra.mxu0 %v1820_v59 }
 0x18d   :  { %1273 = vmatmul.mubr.bf16.vlgmr.msra.gmra.mrb[8].mxu1 %v701_v61  ;;  %1613 = vmatmul.mubr.bf16.vlgmr.msra.gmra.mrb[8].mxu0 %v701_v61 }
 0x240   :  { %v1565_v62 = vpop.f32.mrb[4].mxu0 }
 0x241   :  { %v1566_v63 = vpop.f32.mrb[5].mxu0 }
 0x242   :  { %v1567_v0 = vadd.f32 %v1566_v63, %v1565_v62  ;;  %v1568_v1 = vpop.f32.mrb[6].mxu0 }
 0x243   :  { %v1569_v3 = vpop.f32.mrb[7].mxu0 }
 0x244   :  { %v1316_v7 = vadd.f32 %v1567_v0, %v811_v5 }
 0x260   :  { %v1274_v8 = vpop.f32.mrb[8].mxu1  ;;  %v1355_v9 = vpop.f32.mrb[8].mxu0 }
 0x261   :  { %v1618_v12 = vadd.f32 %v1274_v8, %v803_v48  ;;  %v1356_v13 = vadd.f32 %v1355_v9, %v1316_v7  ;;  %v1276_v14 = vpop.f32.mrb[9].mxu1  ;;  %v1614_v15 = vpop.f32.mrb[9].mxu0 }
 0x262   :  { %v1619_v16 = vadd.f32 %v1276_v14, %v807_v6  ;;  %v1278_v17 = vpop.f32.mrb[10].mxu1  ;;  %v1358_v18 = vpop.f32.mrb[10].mxu0 }
 0x263   :  { %1361 = vst [vmem:[#allocation8] sm:$0xff] %v1618_v12  ;;  %1363 = vst [vmem:[#allocation8 + $0x10] sm:$0xff] %v1356_v13  ;;  %v1279_v11 = vpop.f32.mrb[11].mxu1  ;;  %v1615_v19 = vpop.f32.mrb[11].mxu0 }
 0x264   :  { %1362 = vst [vmem:[#allocation8 + $0x8] sm:$0xff] %v1619_v16 }
 0x265   :  { %1898 = shalt.err (!%p1895_p0)
}
 0x266   :  { %s1899_s10 = scalar_lea.hbm %s2063_s5, 384 }
 0x267   :  { %p1900_p1 = scmp.ne.s32.totalorder %s2063_s5, %s1899_s10  ;;  %p1903_p2 = scmp.lt.u32.totalorder %s1899_s10, %s2063_s5 }
 0x269   :  { %p1905_p3 = pnand %p1903_p2, %p1900_p1 }
 0x26b   :  { %1908 = shalt.err (!%p1905_p3)
}
 0x26c   :  { %1373 = dma.vmem_to_hbm [thread:$0]  %s1371_s7, 384, %s2063_s5, [#allocation4]  }
 0x26d   :  { %1913 = dma.done.wait [#allocation4], 384  }
 0x26e   :  { %1914 = vsyncadd [#allocation4], 4294966912 }
 0x26f   :  { %1377 = vsyncpa [#allocation3], 1 }
 0x270   :  { %1378 = vsyncpa [#allocation6], 1 }
 0x271   :  { %1379 = vsyncpa [#allocation4], 1 }

</bundles_post_ra>
